<compile_context>
chip_gen: v7x
topology: tpu7x:2x2x1
jax: 0.10.0
libtpu: 0.0.40
codegen_flags: <defaults>
</compile_context>

<pallas_src>
import functools

import jax
import jax.numpy as jnp
from jax.experimental import pallas as pl
from jax.experimental.pallas import tpu as pltpu

# Finite "minus infinity" for masked lanes/rows.  Fine for f32/bf16 logits;
# would overflow to -inf for float16 inputs (keep logits in bf16/f32).
_NEG_LARGE = -1e30


def _round_up(x, m):
    return ((x + m - 1) // m) * m


def _cdiv(a, b):
    return -(-a // b)


# ----------------------------------------------------------------------------
# Kernel 1: CLIP contrastive loss, tiled over row blocks of the (B, B) logits.
#   logits_per_image = scale * img @ txt.T, logits_per_text = its transpose
#   loss = clip_w * 0.5 * (CE(rows, arange(B)) + CE(cols, arange(B)))
# Row-wise LSE / diagonal are accumulated as scalars; column-wise LSE is an
# online (max, sumexp) pair carried in a (1, B) scratch across row tiles.
# ----------------------------------------------------------------------------
def _clip_loss_kernel(scale_ref, img_ref, txt_ref, out_ref,
                      colm_sc, coll_sc, rowlse_sc, diag_sc,
                      *, clip_weight, batch, mask_rows):
    i = pl.program_id(0)
    n_i = pl.num_programs(0)

    @pl.when(i == 0)
    def _init():
        colm_sc[...] = jnp.full_like(colm_sc, _NEG_LARGE)
        coll_sc[...] = jnp.zeros_like(coll_sc)
        rowlse_sc[...] = jnp.zeros_like(rowlse_sc)
        diag_sc[...] = jnp.zeros_like(diag_sc)

    scale = scale_ref[0, 0]
    img = img_ref[...]                                    # (RB, D)
    txt = txt_ref[...]                                    # (B, D), resident
    RB = img.shape[0]

    # Contract the shared D axis on the MXU (no txt.T materialization),
    # accumulate in f32.
    logits = scale * jax.lax.dot_general(
        img, txt, dimension_numbers=(((1,), (1,)), ((), ())),
        preferred_element_type=jnp.float32)               # (RB, B) f32

    row_ids = i * RB + jax.lax.broadcasted_iota(jnp.int32, (RB, 1), 0)
    if mask_rows:
        # Partial trailing row block: out-of-range rows may contain garbage
        # (NaN/Inf).  Mask them to a large finite negative *before* any
        # max/exp so nothing poisons the column statistics.
        row_valid = row_ids < batch                       # (RB, 1) bool
        logits = jnp.where(row_valid, logits, _NEG_LARGE)

    # Diagonal taken from the f32 logits (same precision as the LSE).
    col_iota = jax.lax.broadcasted_iota(jnp.int32, logits.shape, 1)
    diag = jnp.sum(jnp.where(col_iota == row_ids, logits, 0.0),
                   axis=-1, keepdims=True)                # (RB, 1)

    # Row-wise LSE (image -> text CE).
    m_r = jnp.max(logits, axis=-1, keepdims=True)
    lse_r = m_r + jnp.log(jnp.sum(jnp.exp(logits - m_r), axis=-1, keepdims=True))

    if mask_rows:
        lse_r = jnp.where(row_valid, lse_r, 0.0)
        diag = jnp.where(row_valid, diag, 0.0)

    rowlse_sc[...] += jnp.sum(lse_r, keepdims=True)
    diag_sc[...] += jnp.sum(diag, keepdims=True)

    # Column-wise online LSE (text -> image CE).
    c_max = jnp.max(logits, axis=0, keepdims=True)        # (1, B)
    m_new = jnp.maximum(colm_sc[...], c_max)
    coll_sc[...] = coll_sc[...] * jnp.exp(colm_sc[...] - m_new) + \
        jnp.sum(jnp.exp(logits - m_new), axis=0, keepdims=True)
    colm_sc[...] = m_new

    @pl.when(i == n_i - 1)
    def _finalize():
        col_lse_sum = jnp.sum(colm_sc[...] + jnp.log(coll_sc[...]), keepdims=True)
        ce_img = (rowlse_sc[...] - diag_sc[...]) / batch
        ce_txt = (col_lse_sum - diag_sc[...]) / batch
        out_ref[...] = clip_weight * 0.5 * (ce_img + ce_txt)


def clip_loss(image_features, text_features, logit_scale, clip_loss_weight,
              row_tile=256):
    B, D = image_features.shape
    scale2d = jnp.asarray(logit_scale, jnp.float32).reshape(1, 1)

    if B <= row_tile:
        RB = B                                  # single full-extent block
    else:
        RB = max(8, (row_tile // 8) * 8)
    GB = _cdiv(B, RB)
    mask_rows = (B % RB) != 0

    feat_itemsize = jnp.dtype(image_features.dtype).itemsize
    vmem_need = ((B * D + 2 * RB * D) * feat_itemsize
                 + 3 * RB * B * 4 + 4 * B * 4 + (2 << 20))
    vmem_limit = int(min(max(vmem_need, 32 << 20), 64 << 20))

    kernel = functools.partial(_clip_loss_kernel,
                               clip_weight=float(clip_loss_weight),
                               batch=int(B), mask_rows=bool(mask_rows))
    out = pl.pallas_call(
        kernel,
        out_shape=jax.ShapeDtypeStruct((1, 1), jnp.float32),
        grid_spec=pltpu.PrefetchScalarGridSpec(
            num_scalar_prefetch=0,
            grid=(GB,),
            in_specs=[
                pl.BlockSpec(memory_space=pltpu.SMEM),     # logit_scale scalar
                pl.BlockSpec((RB, D), lambda i: (i, 0)),   # image row tile
                pl.BlockSpec((B, D), lambda i: (0, 0)),    # all text (resident)
            ],
            out_specs=pl.BlockSpec((1, 1), lambda i: (0, 0)),
            scratch_shapes=[
                pltpu.VMEM((1, B), jnp.float32),   # column running max
                pltpu.VMEM((1, B), jnp.float32),   # column running sum(exp)
                pltpu.VMEM((1, 1), jnp.float32),   # sum of row-wise LSE
                pltpu.VMEM((1, 1), jnp.float32),   # sum of diagonal
            ],
        ),
        compiler_params=pltpu.CompilerParams(
            # Sequential accumulation across row tiles -> reduction axis.
            dimension_semantics=("arbitrary",),
            vmem_limit_bytes=vmem_limit,
        ),
    )(scale2d, image_features, text_features)
    return out[0, 0]


# ----------------------------------------------------------------------------
# Kernel 2: caption loss = CrossEntropyLoss(ignore_index=pad_id) over
#   logits (N, V) vs labels (N,), mean over non-pad tokens.
#   Grid = (row tiles, vocab tiles); online logsumexp over the vocab axis.
#   Remainder tiles are masked in-kernel (no HBM-level padding of logits).
# ----------------------------------------------------------------------------
def _caption_loss_kernel(logits_ref, labels_ref, total_ref, count_ref,
                         m_sc, l_sc, corr_sc, *, pad_id, vocab, mask_cols):
    j = pl.program_id(1)
    n_j = pl.num_programs(1)

    @pl.when(j == 0)
    def _init():
        m_sc[...] = jnp.full_like(m_sc, _NEG_LARGE)
        l_sc[...] = jnp.zeros_like(l_sc)
        corr_sc[...] = jnp.zeros_like(corr_sc)

    logits = logits_ref[...]          # (R, Vt) in input dtype (no full-tile cast)
    labels = labels_ref[...]          # (R, 1) int32
    R, Vt = logits.shape

    # Lane iota is constant across tiles; compare against (label - tile offset)
    # and (V - tile offset) instead of materializing absolute vocab ids.
    lane = jax.lax.broadcasted_iota(jnp.int32, (R, Vt), 1)

    if mask_cols:
        # Partial trailing vocab tile: out-of-range lanes may contain garbage.
        # Force them to a large finite negative so they never win the max and
        # exp() underflows to 0.
        logits = jnp.where(lane < (vocab - j * Vt), logits, _NEG_LARGE)

    # Online logsumexp over the vocab axis (f32 scratch; promotion handles it).
    tile_max = jnp.max(logits, axis=-1, keepdims=True)            # (R, 1)
    m_new = jnp.maximum(m_sc[...], tile_max)
    alpha = jnp.exp(m_sc[...] - m_new)
    p = jnp.exp(logits - m_new)                                   # (R, Vt) f32
    l_sc[...] = alpha * l_sc[...] + jnp.sum(p, axis=-1, keepdims=True)
    m_sc[...] = m_new

    # Correct-class logit: each label falls in exactly one vocab tile.
    rel = labels - j * Vt                                         # (R, 1)
    corr_sc[...] += jnp.sum(jnp.where(lane == rel, logits, 0.0),
                            axis=-1, keepdims=True)

    @pl.when(j == n_j - 1)
    def _finalize():
        per_tok = m_sc[...] + jnp.log(l_sc[...]) - corr_sc[...]   # (R, 1)
        valid = labels != pad_id                                  # (R, 1) bool
        # Select (not multiply) so garbage rows of a partial row tile can
        # never inject NaN into the partial sums.
        total_ref[0] = jnp.sum(jnp.where(valid, per_tok, 0.0), keepdims=True)
        count_ref[0] = jnp.sum(valid.astype(jnp.float32), keepdims=True)


def caption_loss(logits, labels, pad_id, caption_loss_weight,
                 row_tile=256, vocab_tile=4096):
    B, T, V = logits.shape
    N = B * T
    logits2d = logits.reshape(N, V)                   # free reshape, no copy
    labels2d = labels.astype(jnp.int32).reshape(N, 1)

    # Row tile: multiple of 8; keep >= 2 row tiles when possible so the
    # "parallel" row axis can shard across the two v7x TensorCores.
    if N <= 8:
        R = N
    else:
        R = min(max(8, (row_tile // 8) * 8), _round_up(_cdiv(N, 2), 8))
    G = _cdiv(N, R)
    Np = G * R

    # Vocab tile: multiple of 128 (or full extent when V is small).
    if V <= vocab_tile:
        Vt = V
    else:
        Vt = max(128, (vocab_tile // 128) * 128)
    VJ = _cdiv(V, Vt)
    mask_cols = (V % Vt) != 0

    # Only the tiny label column gets padded (a few KB); the big (N, V) logits
    # tensor streams straight from HBM with in-kernel edge masking.
    if Np != N:
        labels2d = jnp.pad(labels2d, ((0, Np - N), (0, 0)),
                           constant_values=pad_id)

    itemsize = jnp.dtype(logits2d.dtype).itemsize
    vmem_need = 3 * R * Vt * itemsize + (2 << 20)
    vmem_limit = int(min(max(vmem_need, 32 << 20), 64 << 20))

    kernel = functools.partial(_caption_loss_kernel, pad_id=int(pad_id),
                               vocab=int(V), mask_cols=bool(mask_cols))
    totals, counts = pl.pallas_call(
        kernel,
        out_shape=(jax.ShapeDtypeStruct((G, 1, 1), jnp.float32),
                   jax.ShapeDtypeStruct((G, 1, 1), jnp.float32)),
        grid_spec=pltpu.PrefetchScalarGridSpec(
            num_scalar_prefetch=0,
            grid=(G, VJ),
            in_specs=[
                # Logits tile; partial trailing blocks handled in-kernel.
                # TODO(synk): try pipeline_mode=pl.Buffered(3) if xprof shows
                # exposed DMA at tile boundaries (budget VMEM on v7x first).
                pl.BlockSpec((R, Vt), lambda i, j: (i, j)),
                pl.BlockSpec((R, 1), lambda i, j: (i, 0)),    # labels tile
            ],
            out_specs=(
                pl.BlockSpec((1, 1, 1), lambda i, j: (i, 0, 0)),  # partial sums
                pl.BlockSpec((1, 1, 1), lambda i, j: (i, 0, 0)),  # partial counts
            ),
            scratch_shapes=[
                pltpu.VMEM((R, 1), jnp.float32),   # running max
                pltpu.VMEM((R, 1), jnp.float32),   # running sum(exp)
                pltpu.VMEM((R, 1), jnp.float32),   # correct-class logit
            ],
        ),
        compiler_params=pltpu.CompilerParams(
            dimension_semantics=("parallel", "arbitrary"),
            vmem_limit_bytes=vmem_limit,
        ),
        cost_estimate=pl.CostEstimate(
            flops=6 * N * V,
            transcendentals=N * V,
            bytes_accessed=N * V * itemsize + 3 * N * 4,
        ),
    )(logits2d, labels2d)

    total = jnp.sum(totals)
    count = jnp.sum(counts)
    # NOTE: matches torch CrossEntropyLoss(ignore_index): all-pad input -> NaN.
    return caption_loss_weight * total / count


# ----------------------------------------------------------------------------
# CoCaLoss wrapper (world_size == 1 path).
# ----------------------------------------------------------------------------
class CoCaLossPallas:
    def __init__(self, caption_loss_weight, clip_loss_weight, pad_id=0,
                 row_tile=256, vocab_tile=4096, clip_row_tile=256):
        self.caption_loss_weight = caption_loss_weight
        self.clip_loss_weight = clip_loss_weight
        self.pad_id = pad_id
        self.row_tile = row_tile
        self.vocab_tile = vocab_tile
        self.clip_row_tile = clip_row_tile

    def __call__(self, image_features, text_features, logits, labels, logit_scale):
        # TODO(synk): world_size > 1 gather_features (distributed all-gather)
        # path is not implemented; single-device semantics only.
        if self.clip_loss_weight:
            c_loss = clip_loss(image_features, text_features, logit_scale,
                               self.clip_loss_weight,
                               row_tile=self.clip_row_tile)
        else:
            c_loss = jnp.float32(0.0)
        cap = caption_loss(logits, labels, self.pad_id,
                           self.caption_loss_weight,
                           row_tile=self.row_tile, vocab_tile=self.vocab_tile)
        return c_loss, cap


# ----------------------------------------------------------------------------
# Pure-JAX reference for sanity checking.
# ----------------------------------------------------------------------------
def _reference(image_features, text_features, logits, labels, logit_scale,
               clip_w, cap_w, pad_id):
    B = image_features.shape[0]
    lpi = logit_scale * image_features @ text_features.T
    lpt = lpi.T
    tgt = jnp.arange(B)

    def ce(lg, lab):
        lse = jax.scipy.special.logsumexp(lg, axis=-1)
        return jnp.mean(lse - lg[jnp.arange(lg.shape[0]), lab])

    clip_l = clip_w * 0.5 * (ce(lpi, tgt) + ce(lpt, tgt))

    _, _, V = logits.shape
    lg = logits.reshape(-1, V)
    lab = labels.reshape(-1)
    lse = jax.scipy.special.logsumexp(lg, axis=-1)
    per = lse - lg[jnp.arange(lg.shape[0]), lab]
    mask = (lab != pad_id).astype(jnp.float32)
    cap_l = cap_w * jnp.sum(per * mask) / jnp.sum(mask)
    return clip_l, cap_l


if __name__ == "__main__":
    key = jax.random.PRNGKey(0)
    k1, k2, k3, k4 = jax.random.split(key, 4)

    B, D = 20, 32      # batch, embedding dim (B chosen to exercise partial tiles)
    T, V = 7, 200      # caption length, vocab (exercise row + vocab remainder)
    pad_id = 0

    image_features = jax.random.normal(k1, (B, D), jnp.float32)
    text_features = jax.random.normal(k2, (B, D), jnp.float32)
    cap_logits = jax.random.normal(k3, (B, T, V), jnp.float32)
    cap_labels = jax.random.randint(k4, (B, T), 0, V, jnp.int32)
    cap_labels = cap_labels.at[:, -2:].set(pad_id)   # exercise ignore_index
    logit_scale = jnp.float32(2.6592)

    # Small tiles so the demo exercises the (row, vocab) grid, the partial-tile
    # masking, and the tiled CLIP path.
    loss_mod = CoCaLossPallas(caption_loss_weight=2.0, clip_loss_weight=1.0,
                              pad_id=pad_id, row_tile=16, vocab_tile=128,
                              clip_row_tile=8)
    c_loss, cap_loss_v = loss_mod(image_features, text_features, cap_logits,
                                  cap_labels, logit_scale)
    jax.block_until_ready((c_loss, cap_loss_v))

    ref_c, ref_cap = _reference(image_features, text_features, cap_logits,
                                cap_labels, logit_scale, 1.0, 2.0, pad_id)
    assert jnp.allclose(c_loss, ref_c, rtol=1e-4, atol=1e-4), (c_loss, ref_c)
    assert jnp.allclose(cap_loss_v, ref_cap, rtol=1e-4, atol=1e-4), (cap_loss_v, ref_cap)

    print("KERNEL_OK")
</pallas_src>

<mosaic_0001>
module attributes {stable_mosaic.version = 11 : i64} {
  func.func @_clip_loss_kernel(%arg0: i32, %arg1: memref<1x1xf32, #tpu.memory_space<smem>>, %arg2: memref<8x32xf32, #tpu.memory_space<vmem>>, %arg3: memref<20x32xf32, #tpu.memory_space<vmem>>, %arg4: memref<1x1xf32, #tpu.memory_space<vmem>>, %arg5: memref<1x20xf32, #tpu.memory_space<vmem>>, %arg6: memref<1x20xf32, #tpu.memory_space<vmem>>, %arg7: memref<1x1xf32, #tpu.memory_space<vmem>>, %arg8: memref<1x1xf32, #tpu.memory_space<vmem>>) attributes {dimension_semantics = [#tpu.dimension_semantics<arbitrary>], iteration_bounds = array<i64: 3>, scalar_prefetch = 0 : i64, scratch_operands = 4 : i64, tpu.core_type = #tpu.core_type<tc>, window_params = [{transform_indices = @transform_0, window_bounds = array<i64: 1, 1>}, {transform_indices = @transform_1, window_bounds = array<i64: 8, 32>}, {pipeline_mode = #tpu.pipeline_mode<synchronous>, transform_indices = @transform_2, window_bounds = array<i64: 20, 32>}, {pipeline_mode = #tpu.pipeline_mode<synchronous>, transform_indices = @transform_3, window_bounds = array<i64: 1, 1>}]} {
    %c0_i32 = arith.constant 0 : i32
    %0 = arith.cmpi eq, %arg0, %c0_i32 : i32
    %1 = arith.extui %0 : i1 to i32
    %c0_i32_0 = arith.constant 0 : i32
    %2 = arith.cmpi ne, %1, %c0_i32_0 : i32
    scf.if %2 {
      %cst_36 = arith.constant -1.000000e+30 : f32
      %75 = vector.broadcast %cst_36 : f32 to vector<1x20xf32>
      %c0_37 = arith.constant 0 : index
      %c0_38 = arith.constant 0 : index
      %76 = vector.load %arg5[%c0_37, %c0_38] : memref<1x20xf32, #tpu.memory_space<vmem>>, vector<1x20xf32>
      tpu.vector_store %arg5[%c0_37, %c0_38], %75 {strides = array<i32>} : memref<1x20xf32, #tpu.memory_space<vmem>>, vector<1x20xf32>,
      %cst_39 = arith.constant 0.000000e+00 : f32
      %77 = vector.broadcast %cst_39 : f32 to vector<1x20xf32>
      %c0_40 = arith.constant 0 : index
      %c0_41 = arith.constant 0 : index
      %78 = vector.load %arg6[%c0_40, %c0_41] : memref<1x20xf32, #tpu.memory_space<vmem>>, vector<1x20xf32>
      tpu.vector_store %arg6[%c0_40, %c0_41], %77 {strides = array<i32>} : memref<1x20xf32, #tpu.memory_space<vmem>>, vector<1x20xf32>,
      %cst_42 = arith.constant 0.000000e+00 : f32
      %79 = vector.broadcast %cst_42 : f32 to vector<1x1xf32>
      %c0_43 = arith.constant 0 : index
      %c0_44 = arith.constant 0 : index
      %80 = vector.load %arg7[%c0_43, %c0_44] : memref<1x1xf32, #tpu.memory_space<vmem>>, vector<1x1xf32>
      tpu.vector_store %arg7[%c0_43, %c0_44], %79 {strides = array<i32>} : memref<1x1xf32, #tpu.memory_space<vmem>>, vector<1x1xf32>,
      %cst_45 = arith.constant 0.000000e+00 : f32
      %81 = vector.broadcast %cst_45 : f32 to vector<1x1xf32>
      %c0_46 = arith.constant 0 : index
      %c0_47 = arith.constant 0 : index
      %82 = vector.load %arg8[%c0_46, %c0_47] : memref<1x1xf32, #tpu.memory_space<vmem>>, vector<1x1xf32>
      tpu.vector_store %arg8[%c0_46, %c0_47], %81 {strides = array<i32>} : memref<1x1xf32, #tpu.memory_space<vmem>>, vector<1x1xf32>,
    } else {
    }
    %c0 = arith.constant 0 : index
    %c0_1 = arith.constant 0 : index
    %3 = memref.load %arg1[%c0, %c0_1] : memref<1x1xf32, #tpu.memory_space<smem>>
    %c0_2 = arith.constant 0 : index
    %c0_3 = arith.constant 0 : index
    %4 = vector.load %arg2[%c0_2, %c0_3] : memref<8x32xf32, #tpu.memory_space<vmem>>, vector<8x32xf32>
    %c0_4 = arith.constant 0 : index
    %c0_5 = arith.constant 0 : index
    %5 = vector.load %arg3[%c0_4, %c0_5] : memref<20x32xf32, #tpu.memory_space<vmem>>, vector<20x32xf32>
    %cst = arith.constant dense<0.000000e+00> : vector<8x20xf32>
    %6 = tpu.matmul %4, %5, %cst {dimension_numbers = #tpu.dot_dimension_numbers<[1], [1], [0], [0], [0, 0, 1, 0], [], []>} : vector<8x32xf32>, vector<20x32xf32>, vector<8x20xf32> -> vector<8x20xf32>
    %7 = vector.broadcast %3 : f32 to vector<8x20xf32>
    %8 = arith.mulf %7, %6 : vector<8x20xf32>
    %c8_i32 = arith.constant 8 : i32
    %9 = arith.muli %arg0, %c8_i32 : i32
    %10 = tpu.iota {dimensions = array<i32: 0>} : vector<8x1xi32>
    %11 = vector.broadcast %9 : i32 to vector<8x1xi32>
    %12 = arith.addi %11, %10 : vector<8x1xi32>
    %c20_i32 = arith.constant 20 : i32
    %13 = vector.broadcast %c20_i32 : i32 to vector<8x1xi32>
    %14 = arith.cmpi slt, %12, %13 : vector<8x1xi32>
    %cst_6 = arith.constant -1.000000e+30 : f32
    %15 = vector.shape_cast %14 : vector<8x1xi1> to vector<8x1xi1>
    %16 = vector.broadcast %15 : vector<8x1xi1> to vector<8x20xi1>
    %17 = vector.broadcast %cst_6 : f32 to vector<8x20xf32>
    %18 = arith.select %16, %8, %17 : vector<8x20xi1>, vector<8x20xf32>
    %19 = tpu.iota {dimensions = array<i32: 1>} : vector<8x20xi32>
    %20 = vector.broadcast %12 : vector<8x1xi32> to vector<8x20xi32>
    %21 = arith.cmpi eq, %19, %20 : vector<8x20xi32>
    %cst_7 = arith.constant 0.000000e+00 : f32
    %22 = vector.broadcast %cst_7 : f32 to vector<8x20xf32>
    %23 = arith.select %21, %18, %22 : vector<8x20xi1>, vector<8x20xf32>
    %cst_8 = arith.constant dense<0.000000e+00> : vector<8xf32>
    %24 = vector.multi_reduction <add>, %23, %cst_8 [1] : vector<8x20xf32> to vector<8xf32>
    %25 = vector.shape_cast %24 : vector<8xf32> to vector<8x1xf32>
    %cst_9 = arith.constant dense<0xFF800000> : vector<8xf32>
    %26 = vector.multi_reduction <maximumf>, %18, %cst_9 [1] : vector<8x20xf32> to vector<8xf32>
    %27 = vector.shape_cast %26 : vector<8xf32> to vector<8x1xf32>
    %28 = vector.broadcast %27 : vector<8x1xf32> to vector<8x20xf32>
    %29 = arith.subf %18, %28 : vector<8x20xf32>
    %30 = math.exp %29 : vector<8x20xf32>
    %cst_10 = arith.constant dense<0.000000e+00> : vector<8xf32>
    %31 = vector.multi_reduction <add>, %30, %cst_10 [1] : vector<8x20xf32> to vector<8xf32>
    %32 = vector.shape_cast %31 : vector<8xf32> to vector<8x1xf32>
    %33 = math.log %32 : vector<8x1xf32>
    %34 = arith.addf %27, %33 : vector<8x1xf32>
    %cst_11 = arith.constant 0.000000e+00 : f32
    %35 = vector.broadcast %cst_11 : f32 to vector<8x1xf32>
    %36 = arith.select %14, %34, %35 : vector<8x1xi1>, vector<8x1xf32>
    %cst_12 = arith.constant 0.000000e+00 : f32
    %37 = vector.broadcast %cst_12 : f32 to vector<8x1xf32>
    %38 = arith.select %14, %25, %37 : vector<8x1xi1>, vector<8x1xf32>
    %c0_13 = arith.constant 0 : index
    %c0_14 = arith.constant 0 : index
    %39 = vector.load %arg7[%c0_13, %c0_14] : memref<1x1xf32, #tpu.memory_space<vmem>>, vector<1x1xf32>
    %40 = vector.shape_cast %36 : vector<8x1xf32> to vector<1x8x1xf32>
    %cst_15 = arith.constant dense<0.000000e+00> : vector<1xf32>
    %41 = vector.multi_reduction <add>, %40, %cst_15 [1, 2] : vector<1x8x1xf32> to vector<1xf32>
    %42 = vector.shape_cast %41 : vector<1xf32> to vector<1x1x1xf32>
    %43 = vector.extract %42[0, 0, 0] : f32 from vector<1x1x1xf32>
    %44 = vector.broadcast %43 : f32 to vector<1x1xf32>
    %45 = arith.addf %39, %44 : vector<1x1xf32>
    %c0_16 = arith.constant 0 : index
    %c0_17 = arith.constant 0 : index
    %46 = vector.load %arg7[%c0_16, %c0_17] : memref<1x1xf32, #tpu.memory_space<vmem>>, vector<1x1xf32>
    tpu.vector_store %arg7[%c0_16, %c0_17], %45 {strides = array<i32>} : memref<1x1xf32, #tpu.memory_space<vmem>>, vector<1x1xf32>,
    %c0_18 = arith.constant 0 : index
    %c0_19 = arith.constant 0 : index
    %47 = vector.load %arg8[%c0_18, %c0_19] : memref<1x1xf32, #tpu.memory_space<vmem>>, vector<1x1xf32>
    %48 = vector.shape_cast %38 : vector<8x1xf32> to vector<1x8x1xf32>
    %cst_20 = arith.constant dense<0.000000e+00> : vector<1xf32>
    %49 = vector.multi_reduction <add>, %48, %cst_20 [1, 2] : vector<1x8x1xf32> to vector<1xf32>
    %50 = vector.shape_cast %49 : vector<1xf32> to vector<1x1x1xf32>
    %51 = vector.extract %50[0, 0, 0] : f32 from vector<1x1x1xf32>
    %52 = vector.broadcast %51 : f32 to vector<1x1xf32>
    %53 = arith.addf %47, %52 : vector<1x1xf32>
    %c0_21 = arith.constant 0 : index
    %c0_22 = arith.constant 0 : index
    %54 = vector.load %arg8[%c0_21, %c0_22] : memref<1x1xf32, #tpu.memory_space<vmem>>, vector<1x1xf32>
    tpu.vector_store %arg8[%c0_21, %c0_22], %53 {strides = array<i32>} : memref<1x1xf32, #tpu.memory_space<vmem>>, vector<1x1xf32>,
    %cst_23 = arith.constant dense<0xFF800000> : vector<20xf32>
    %55 = vector.multi_reduction <maximumf>, %18, %cst_23 [0] : vector<8x20xf32> to vector<20xf32>
    %56 = vector.shape_cast %55 : vector<20xf32> to vector<1x20xf32>
    %c0_24 = arith.constant 0 : index
    %c0_25 = arith.constant 0 : index
    %57 = vector.load %arg5[%c0_24, %c0_25] : memref<1x20xf32, #tpu.memory_space<vmem>>, vector<1x20xf32>
    %58 = arith.maximumf %57, %56 : vector<1x20xf32>
    %c0_26 = arith.constant 0 : index
    %c0_27 = arith.constant 0 : index
    %59 = vector.load %arg6[%c0_26, %c0_27] : memref<1x20xf32, #tpu.memory_space<vmem>>, vector<1x20xf32>
    %c0_28 = arith.constant 0 : index
    %c0_29 = arith.constant 0 : index
    %60 = vector.load %arg5[%c0_28, %c0_29] : memref<1x20xf32, #tpu.memory_space<vmem>>, vector<1x20xf32>
    %61 = arith.subf %60, %58 : vector<1x20xf32>
    %62 = math.exp %61 : vector<1x20xf32>
    %63 = arith.mulf %59, %62 : vector<1x20xf32>
    %64 = vector.broadcast %58 : vector<1x20xf32> to vector<8x20xf32>
    %65 = arith.subf %18, %64 : vector<8x20xf32>
    %66 = math.exp %65 : vector<8x20xf32>
    %cst_30 = arith.constant dense<0.000000e+00> : vector<20xf32>
    %67 = vector.multi_reduction <add>, %66, %cst_30 [0] : vector<8x20xf32> to vector<20xf32>
    %68 = vector.shape_cast %67 : vector<20xf32> to vector<1x20xf32>
    %69 = arith.addf %63, %68 : vector<1x20xf32>
    %c0_31 = arith.constant 0 : index
    %c0_32 = arith.constant 0 : index
    %70 = vector.load %arg6[%c0_31, %c0_32] : memref<1x20xf32, #tpu.memory_space<vmem>>, vector<1x20xf32>
    tpu.vector_store %arg6[%c0_31, %c0_32], %69 {strides = array<i32>} : memref<1x20xf32, #tpu.memory_space<vmem>>, vector<1x20xf32>,
    %c0_33 = arith.constant 0 : index
    %c0_34 = arith.constant 0 : index
    %71 = vector.load %arg5[%c0_33, %c0_34] : memref<1x20xf32, #tpu.memory_space<vmem>>, vector<1x20xf32>
    tpu.vector_store %arg5[%c0_33, %c0_34], %58 {strides = array<i32>} : memref<1x20xf32, #tpu.memory_space<vmem>>, vector<1x20xf32>,
    %c2_i32 = arith.constant 2 : i32
    %72 = arith.cmpi eq, %arg0, %c2_i32 : i32
    %73 = arith.extui %72 : i1 to i32
    %c0_i32_35 = arith.constant 0 : i32
    %74 = arith.cmpi ne, %73, %c0_i32_35 : i32
    scf.if %74 {
      %c0_36 = arith.constant 0 : index
      %c0_37 = arith.constant 0 : index
      %75 = vector.load %arg5[%c0_36, %c0_37] : memref<1x20xf32, #tpu.memory_space<vmem>>, vector<1x20xf32>
      %c0_38 = arith.constant 0 : index
      %c0_39 = arith.constant 0 : index
      %76 = vector.load %arg6[%c0_38, %c0_39] : memref<1x20xf32, #tpu.memory_space<vmem>>, vector<1x20xf32>
      %77 = math.log %76 : vector<1x20xf32>
      %78 = arith.addf %75, %77 : vector<1x20xf32>
      %79 = vector.shape_cast %78 : vector<1x20xf32> to vector<1x1x20xf32>
      %cst_40 = arith.constant dense<0.000000e+00> : vector<1xf32>
      %80 = vector.multi_reduction <add>, %79, %cst_40 [1, 2] : vector<1x1x20xf32> to vector<1xf32>
      %81 = vector.shape_cast %80 : vector<1xf32> to vector<1x1x1xf32>
      %82 = vector.extract %81[0, 0, 0] : f32 from vector<1x1x1xf32>
      %83 = vector.broadcast %82 : f32 to vector<1x1xf32>
      %c0_41 = arith.constant 0 : index
      %c0_42 = arith.constant 0 : index
      %84 = vector.load %arg7[%c0_41, %c0_42] : memref<1x1xf32, #tpu.memory_space<vmem>>, vector<1x1xf32>
      %c0_43 = arith.constant 0 : index
      %c0_44 = arith.constant 0 : index
      %85 = vector.load %arg8[%c0_43, %c0_44] : memref<1x1xf32, #tpu.memory_space<vmem>>, vector<1x1xf32>
      %86 = arith.subf %84, %85 : vector<1x1xf32>
      %cst_45 = arith.constant 2.000000e+01 : f32
      %87 = vector.broadcast %cst_45 : f32 to vector<1x1xf32>
      %88 = arith.divf %86, %87 : vector<1x1xf32>
      %c0_46 = arith.constant 0 : index
      %c0_47 = arith.constant 0 : index
      %89 = vector.load %arg8[%c0_46, %c0_47] : memref<1x1xf32, #tpu.memory_space<vmem>>, vector<1x1xf32>
      %90 = arith.subf %83, %89 : vector<1x1xf32>
      %cst_48 = arith.constant 2.000000e+01 : f32
      %91 = vector.broadcast %cst_48 : f32 to vector<1x1xf32>
      %92 = arith.divf %90, %91 : vector<1x1xf32>
      %93 = arith.addf %88, %92 : vector<1x1xf32>
      %cst_49 = arith.constant 5.000000e-01 : f32
      %94 = vector.broadcast %cst_49 : f32 to vector<1x1xf32>
      %95 = arith.mulf %94, %93 : vector<1x1xf32>
      %c0_50 = arith.constant 0 : index
      %c0_51 = arith.constant 0 : index
      %96 = vector.load %arg4[%c0_50, %c0_51] : memref<1x1xf32, #tpu.memory_space<vmem>>, vector<1x1xf32>
      tpu.vector_store %arg4[%c0_50, %c0_51], %95 {strides = array<i32>} : memref<1x1xf32, #tpu.memory_space<vmem>>, vector<1x1xf32>,
    } else {
    }
    return
  }
  func.func @transform_0(%arg0: i32) -> (i32, i32) {
    %c0_i32 = arith.constant 0 : i32
    %c0_i32_0 = arith.constant 0 : i32
    %c0_i32_1 = arith.constant 0 : i32
    return %c0_i32, %c0_i32_0 : i32, i32
  }
  func.func @transform_1(%arg0: i32) -> (i32, i32) {
    %c0_i32 = arith.constant 0 : i32
    %c0_i32_0 = arith.constant 0 : i32
    return %arg0, %c0_i32 : i32, i32
  }
  func.func @transform_2(%arg0: i32) -> (i32, i32) {
    %c0_i32 = arith.constant 0 : i32
    %c0_i32_0 = arith.constant 0 : i32
    %c0_i32_1 = arith.constant 0 : i32
    return %c0_i32, %c0_i32_0 : i32, i32
  }
  func.func @transform_3(%arg0: i32) -> (i32, i32) {
    %c0_i32 = arith.constant 0 : i32
    %c0_i32_0 = arith.constant 0 : i32
    %c0_i32_1 = arith.constant 0 : i32
    return %c0_i32, %c0_i32_0 : i32, i32
  }
}

</mosaic_0001>

<bundles_post_ra>
// kernel: tpu_custom_call.1
= control target key start
LH: loop header
LB: loop body
LE: loop exit
PB: predicated region body
PF: predicated region fallthrough
CT: control target
= control target key end

     0   :  { %s944_s0 = inlined_call_operand.<no memory space> [shape: f32[1,1], index: 0, kind: input, shape index: {}]   ;;  %s945_s1 = inlined_call_operand.hbm [shape: f32[20,32], index: 1, kind: input, shape index: {}]   ;;  %s946_s2 = inlined_call_operand.hbm [shape: f32[20,32], index: 2, kind: input, shape index: {}]   ;;  %s947_s3 = inlined_call_operand.hbm [shape: f32[1,1], index: 3, kind: output, shape index: {}]  }
   0x1   :  { %8 = sst [smem:[#allocation6]] %s944_s0 }
   0x2   :  { %9 = vsyncpa [#allocation8], 0 }
   0x3   :  { %11 = vsyncpa [#allocation8 + $0x1], 0 }
   0x4   :  { %12 = vsyncpa [#allocation11], 0 }
   0x5   :  { %13 = vsyncpa [#allocation9], 0  ;;  %s759_s14 = smov 0   ;;  %s761_s15 = smov 0  }
   0x6   :  { %s763_s16 = smov 0   ;;  %s765_s17 = smov 0  }
   0x7 LB: > { %s778_s0 = sadd.s32 4294967295, %s724_s17   ;;  %p60_p0 = scmp.ne.s32.totalorder %s716_s15, %s712_s14  ;;  %s724_s17 = sphi %s765_s17, %s963_s17   ;;  %s720_s16 = sphi %s763_s16, %s962_s16   ;;  %s716_s15 = sphi %s761_s15, %s961_s15   ;;  %s712_s14 = sphi %s759_s14, %s960_s14  }
   0x8   : > { %p948_p1 = scmp.eq.s32.totalorder %s778_s0, 0  ;;  %p482_p2 = scmp.ge.s32.totalorder %s724_s17, 1 }
   0x9   : > { %p113_p3 = scmp.lt.s32.totalorder %s724_s17, 4  ;;  %s726_s20 = smov [#allocation10]  }
   0xa   : > { %p787_p5 = por %p948_p1, %p60_p0  ;;  %s128_s21 = sshll.u32 %s726_s20, 4  ;;  %s129_s21 = int_to_ptr.vmem [resolvable:$true] %s128_s21 }
   0xb   : > { %p791_p6 = pnand %p482_p2, %p113_p3  ;;  %s804_s23 = sadd.s32 1, %s724_s17  }
   0xc   : > { %s951_s18 = scalar_select %p787_p5, 1, 0 }
   0xd   : > { %s952_s19 = scalar_select %p791_p6, 1, 0 }
   0xe   : > { %p534_p7 = pneg %p791_p6  ;;  %s47_s24 = sadd.s32 1, %s720_s16 }
   0xf   : > { %s44_s25 = ssub.s32 %s724_s17, %s804_s23  ;;  %s598_s28 = scalar_lea.hbm %s946_s2, 384 }
  0x10   : > { %p799_p8 = pnand %p534_p7, %p948_p1  ;;  %p599_p9 = scmp.ne.s32.totalorder %s946_s2, %s598_s28 }
  0x11   : > { %p605_p13 = scmp.lt.u32.totalorder %s598_s28, %s946_s2 }
  0x12   : > { %p600_p10 = pneg %p799_p8 }
  0x14   : > { %p601_p11 = pnand %p600_p10, %p599_p9 }
  0x16   : > { %p602_p12 = pneg %p601_p11 }
  0x18   : > { %p607_p0 = pnand %p605_p13, %p602_p12 }
  0x1a   : > { %610 = shalt.err (!%p607_p0)
}
  0x1b   : > { %s611_s6 = scalar_lea.vmem %s129_s21, 384  ;;  %p619_p4 = scmp.lt.s32.totalorder %s129_s21, %s129_s21 }
  0x1c   : > { %p612_p2 = scmp.ne.s32.totalorder %s129_s21, %s611_s6  ;;  %p620_p1 = scmp.lt.s32.totalorder %s611_s6, %s611_s6 }
  0x1e   : > { %p614_p3 = pnand %p612_p2, %p600_p10  ;;  %p621_p5 = por %p620_p1, %p619_p4 }
  0x20   : > { %p615_p7 = pneg %p614_p3 }
  0x22   : > { %p622_p6 = pnand %p621_p5, %p615_p7 }
  0x24   : > { %625 = shalt.err (!%p622_p6)
}
  0x25   : > { %s727_s7 = smov 128   ;;  %s728_s8 = smov 8  }
  0x26   : > { %537 = dma.hbm_to_vmem [thread:$0]  (!%p799_p8), %s946_s2, 384, %s129_s21, [#allocation11], %s727_s7, %s727_s7, %s728_s8  }
  0x27   : > { %p45_p9 = scmp.eq.s32.totalorder %s44_s25, 0  ;;  %p54_p10 = scmp.ne.s32.totalorder %s720_s16, %s716_s15 }
  0x28   : > { %p55_p1 = scmp.eq.s32.totalorder %s724_s17, 0  ;;  %p543_p4 = scmp.lt.s32.totalorder %s724_s17, 3 }
  0x29   : > { %s830_s11 = scalar_select %p45_p9, %s720_s16, %s47_s24  }
  0x2a   : > { %p56_p5 = por %p55_p1, %p54_p10  ;;  %s142_s12 = sand.u32 1, %s720_s16  }
  0x2b   : > { %s485_s13 = sshll.u32 %s142_s12, 3  ;;  %s486_s14 = sshll.u32 %s724_s17, 7 }
  0x2c   : > { %s837_s27 = scalar_lea.hbm %s945_s1, %s486_s14  ;;  %s146_s21 = scalar_lea.vmem [#allocation7], %s485_s13 }
  0x2d   : > { %s153_s22 = sshll.u32 %s146_s21, 4  ;;  %p841_p6 = pnand %p543_p4, %p56_p5  ;;  %s839_s22 = int_to_ptr.vmem [resolvable:$true] %s153_s22 }
  0x2e   : > { %s143_s17 = scalar_lea.sflag [#allocation8], %s142_s12  ;;  %s626_s25 = scalar_lea.hbm %s837_s27, 128 }
  0x2f   : > { %p627_p8 = scmp.ne.s32.totalorder %s837_s27, %s626_s25  ;;  %p628_p11 = pneg %p841_p6 }
  0x30   : > { %s631_s30 = scalar_lea.hbm %s945_s1, 384  ;;  %p632_p0 = scmp.lt.u32.totalorder %s837_s27, %s945_s1 }
  0x31   : > { %p629_p12 = pnand %p628_p11, %p627_p8  ;;  %p633_p2 = scmp.lt.u32.totalorder %s631_s30, %s626_s25 }
  0x32   : > { %p635_p7 = scmp.lt.u32.totalorder %s626_s25, %s837_s27 }
  0x33   : > { %p630_p13 = pneg %p629_p12  ;;  %p634_p3 = por %p633_p2, %p632_p0 }
  0x35   : > { %p636_p9 = por %p635_p7, %p634_p3 }
  0x37   : > { %p637_p10 = pnand %p636_p9, %p630_p13 }
  0x39   : > { %640 = shalt.err (!%p637_p10)
}
  0x3a   : > { %s641_s6 = scalar_lea.vmem %s839_s22, 128  ;;  %s729_s7 = smov [#allocation7]  }
  0x3b   : > { %p642_p1 = scmp.ne.s32.totalorder %s839_s22, %s641_s6  ;;  %s646_s8 = sshll.u32 %s729_s7, 4  ;;  %s647_s8 = int_to_ptr.vmem [resolvable:$false] %s646_s8 }
  0x3c   : > { %s648_s9 = scalar_lea.vmem %s647_s8, 256  ;;  %p649_p8 = scmp.lt.s32.totalorder %s839_s22, %s647_s8 }
  0x3d   : > { %p644_p4 = pnand %p642_p1, %p628_p11  ;;  %p650_p12 = scmp.lt.s32.totalorder %s648_s9, %s641_s6 }
  0x3f   : > { %p645_p5 = pneg %p644_p4  ;;  %p651_p0 = por %p650_p12, %p649_p8 }
  0x41   : > { %p652_p2 = pnand %p651_p0, %p645_p5 }
  0x43   : > { %655 = shalt.err (!%p652_p2)
}
  0x44   : > { %541 = dma.hbm_to_vmem [thread:$0]  (!%p841_p6), %s837_s27, 128, %s839_s22, %s143_s17  }
  0x45   : > { %p955_p13 = scmp.ne.s32.totalorder %s952_s19, 0 }
  0x46   : > { %s164_s10 = sand.u32 (!%p955_p13), 1, %s716_s15   ;;  %p956_p11 = scmp.ne.s32.totalorder (!%p955_p13), %s951_s18, 0 }
  0x47   : > { %162 = sbr.rel (%p955_p13) target bundleno = 888 (0x378), region = 32  ;;  %s873_s12 = sshll.u32 (!%p955_p13), %s164_s10, 3 }
  0x48   : > { %s165_s13 = scalar_lea.sflag (!%p955_p13), [#allocation8], %s164_s10  ;;  %s168_s14 = scalar_lea.vmem (!%p955_p13), [#allocation7], %s873_s12 }
  0x4e   : > { %699 = dma.done.wait (%p956_p11), %s165_s13, 128  }
  0x4f   : > { %701 = vsyncadd (%p956_p11), %s165_s13, 4294967168  ;;  %p957_p3 = scmp.eq.s32.totalorder %s778_s0, 0 }
  0x51   : > { %703 = dma.done.wait (%p957_p3), [#allocation11], 384   ;;  %p958_p6 = pmov %p957_p3 }
  0x52   : > { %p959_p7 = scmp.ne.s32.totalorder %s778_s0, 0 }
  0x53   : > { %705 = vsyncadd (%p958_p6), [#allocation11], 4294966912  ;;  %vm194_vm0 = vcmask (!%p959_p7), 155648   ;;  %vm197_vm1 = vcmask (!%p959_p7), 0   ;;  %v730_v0 = vmov (!%p959_p7), -1e+30  }
  0x54   : > { %193 = sbr.rel (%p959_p7) target bundleno = 91 (0x5b), region = 44  ;;  %195 = vst.msk [vmem:[#allocation2] sm:$0x1] (!%p959_p7), %vm194_vm0, %v730_v0  ;;  %v731_v1 = vmov (!%p959_p7), 0.0  }
  0x55   : > { %196 = vst.msk [vmem:[#allocation3] sm:$0x1] (!%p959_p7), %vm194_vm0, %v731_v1 }
  0x56   : > { %198 = vst.msk [vmem:[#allocation4] sm:$0x1] (!%p959_p7), %vm197_vm1, %v731_v1  ;;  %199 = vst.msk [vmem:[#allocation5] sm:$0x1] (!%p959_p7), %vm197_vm1, %v731_v1 }
  0x5b PF: > { %v202_v2 = vld [vmem:[#allocation10] sm:$0xff]  ;;  %v203_v3 = vld [vmem:[#allocation10 + $0x8] sm:$0xff]  ;;  %vm205_vm2 = vcmask 261120   ;;  %v732_v4 = vmov 0.0|0.0   ;;  %vm733_vm4 = vmmov 0   ;;  %v734_v6 = vmov 0.0  }
  0x5c   : > { %514 = vmatprep.subr.bf16.mxu0 %v732_v4  ;;  %v515_v5 = vpack.c.bf16 %v203_v3, %v202_v2  ;;  %vm516_vm3 = vmpackc.low %vm205_vm2, %vm205_vm2  ;;  %511 = vmatprep.mubr.msk.f32.mxu0 %vm733_vm4, %v734_v6  ;;  %v204_v7 = vld [vmem:[#allocation10 + $0x10] sm:$0xf]  ;;  %v291_v9 = vlaneseq  ;;  %s200_s18 = sld [smem:[#allocation6]]  ;;  %s495_s19 = sshll.u32 %s778_s0, 3  ;;  %vm303_vm6 = vcmask 162816   ;;  %vm381_vm8 = vcmask 155648  }
  0x5d   : > { %v201_v8 = vld [vmem:[%s168_s14] sm:$0xff]  ;;  %v293_v11 = vstv %s495_s19  ;;  %v357_v27 = vld [vmem:[#allocation2] sm:$0x1]  ;;  %v359_v43 = vld [vmem:[#allocation3] sm:$0x1]  ;;  %vm322_vm9 = vcmask 7168  }
  0x5e   : > { %517 = vmatpush3.bf16.xpose.msk.msra.mxu0 %vm516_vm3, %v515_v5  ;;  %v292_v10 = vshrl.u32 %v291_v9, 7  ;;  %v300_v13 = vand.u32 127, %v291_v9  ;;  %vm335_vm10 = vcmask 0   ;;  %p496_p9 = scmp.ne.s32.totalorder %s778_s0, 2 }
  0x5f   : > { %509 = vmatprep.subr.mxu0 %v734_v6 }
  0x60   : > { %v887_v12 = vadd.s32 %v293_v11, %v292_v10  ;;  %v367_v28 = vsub.s32 0, %v292_v10 }
  0x62   : > { %v288_v14 = vstv %s200_s18  ;;  %vm295_vm5 = vcmp.lt.s32.totalorder %v887_v12, 20  ;;  %vm301_vm7 = vcmp.eq.s32.totalorder %v300_v13, %v887_v12  ;;  %v321_v12 = vld [vmem:[#allocation4] sm:$0x1]  ;;  %v337_v13 = vld [vmem:[#allocation5] sm:$0x1] }
  0x66   : > { %510 = vmatpush3.xpose.msk.msra.mxu0 %vm205_vm2, %v204_v7 }
  0x69   : > { %512 = vmatmul.mubr.msk.f32.vlgmr.msra.gmra.mrb[0].mxu0 %vm205_vm2, %v201_v8 }
 0x13c   : > { %v284_v15 = vpop.f32.mrb[0].mxu0 }
 0x13d   : > { %v289_v16 = vmul.f32 %v288_v14, %v284_v15  ;;  %v513_v17 = vpop.f32.mrb[1].mxu0 }
 0x13f   : > { %v298_v18 = vsel %vm295_vm5, %v289_v16, -1e+30 }
 0x140   : > { %v307_v19 = vsel %vm303_vm6, %v298_v18, -inf  ;;  %v302_v20 = vsel %vm301_vm7, %v298_v18, 0.0 }
 0x141   : > { %308 = vmax.xlane.f32.xlu0 %v307_v19  ;;  %v351_v21 = vrot.slane %v307_v19, 4  ;;  %v304_v22 = vsel %vm303_vm6, %v302_v20, 0.0 }
 0x142   : > { %305 = vadd.xlane.f32.xlu1 %v304_v22 }
 0x143   : > { %v352_v23 = vmax.f32 %v307_v19, %v351_v21 }
 0x145   : > { %v353_v24 = vrot.slane %v352_v23, 2 }
 0x147   : > { %v354_v25 = vmax.f32 %v352_v23, %v353_v24 }
 0x149   : > { %v355_v26 = vrot.slane %v354_v25, 1 }
 0x14b   : > { %v356_v29 = vmax.f32 %v354_v25, %v355_v26 }
 0x14d   : > { %v358_v30 = vmax.f32 %v357_v27, %v356_v29 }
 0x14f   : > { %v368_v31 = vrot.slane %v358_v30, %v367_v28  ;;  %383 = vst.msk [vmem:[#allocation2] sm:$0x1] %vm381_vm8, %v358_v30  ;;  %v360_v34 = vsub.f32 %v357_v27, %v358_v30 }
 0x151   : > { %v370_v32 = vsub.f32 %v298_v18, %v368_v31  ;;  %v361_v35 = vmul.f32 1.442695, %v360_v34 }
 0x153   : > { %v371_v33 = vmul.f32 1.442695, %v370_v32 }
 0x155   : > { %588 = vpow2.f32 %v371_v33 }
 0x156   : > { %590 = vpow2.f32 %v361_v35  ;;  %v388_v20 = vld [vmem:[#allocation2] sm:$0x1] (!%p496_p9) }
 0x15f   : > { %v589_v36 = vpop.eup %588 }
 0x160   : > { %v373_v37 = vsel %vm303_vm6, %v589_v36, 0.0  ;;  %v591_v42 = vpop.eup %590 }
 0x161   : > { %v374_v38 = vrot.slane %v373_v37, 4  ;;  %v363_v45 = vmul.f32 %v591_v42, %v359_v43 }
 0x163   : > { %v375_v39 = vadd.f32 %v374_v38, %v373_v37 }
 0x165   : > { %v376_v40 = vrot.slane %v375_v39, 2 }
 0x167   : > { %v377_v41 = vadd.f32 %v376_v40, %v375_v39 }
 0x169   : > { %v378_v44 = vrot.slane %v377_v41, 1 }
 0x16b   : > { %v379_v46 = vadd.f32 %v378_v44, %v377_v41 }
 0x16d   : > { %v380_v47 = vadd.f32 %v379_v46, %v363_v45 }
 0x16f   : > { %382 = vst.msk [vmem:[#allocation3] sm:$0x1] %vm381_vm8, %v380_v47 }
 0x1ce   : > { %v309_v48 = vpop.xlane.xlu0 %308 }
 0x1cf   : > { %v310_v49 = vsub.f32 %v298_v18, %v309_v48  ;;  %v306_v51 = vpop.xlane.xlu1 %305  ;;  %v389_v18 = vld [vmem:[#allocation3] sm:$0x1] (!%p496_p9) }
 0x1d0   : > { %v320_v54 = vsel %vm295_vm5, %v306_v51, 0.0 }
 0x1d1   : > { %v311_v50 = vmul.f32 1.442695, %v310_v49  ;;  %v338_v55 = vsel %vm322_vm9, %v320_v54, 0.0 }
 0x1d3   : > { %592 = vpow2.f32 %v311_v50 }
 0x1dd   : > { %v593_v52 = vpop.eup %592 }
 0x1de   : > { %v313_v53 = vsel %vm303_vm6, %v593_v52, 0.0 }
 0x1df   : > { %314 = vadd.xlane.f32.xlu0 %v313_v53 }
 0x1e3   : > { %339 = vadd.xlane.f32.xlu0 %v338_v55 }
 0x26c   : > { %v315_v56 = vpop.xlane.xlu0 %314 }
 0x26d   : > { %594 = vlog2.f32 %v315_v56 }
 0x26e   : > { %596 = vlog2.f32 (!%p496_p9), %v389_v18 }
 0x270   : > { %v340_v62 = vpop.xlane.xlu0 %339 }
 0x271   : > { %v341_v63 = vrot.slane %v340_v62, 4 }
 0x273   : > { %v342_v0 = vadd.f32 %v341_v63, %v340_v62 }
 0x275   : > { %v343_v1 = vrot.slane %v342_v0, 2 }
 0x277   : > { %v595_v57 = vpop.eup %594  ;;  %v344_v5 = vadd.f32 %v343_v1, %v342_v0 }
 0x278   : > { %v317_v58 = vmul.f32 0.6931472, %v595_v57  ;;  %v597_v19 = vpop.eup (!%p496_p9), %596 }
 0x279   : > { %v345_v8 = vrot.slane %v344_v5, 1  ;;  %v391_v21 = vmul.f32 (!%p496_p9), 0.6931472, %v597_v19 }
 0x27a   : > { %v318_v59 = vadd.f32 %v317_v58, %v309_v48 }
 0x27b   : > { %v346_v11 = vadd.f32 %v345_v8, %v344_v5  ;;  %v392_v22 = vadd.f32 (!%p496_p9), %v391_v21, %v388_v20 }
 0x27c   : > { %v319_v60 = vsel %vm295_vm5, %v318_v59, 0.0 }
 0x27d   : > { %v323_v61 = vsel %vm322_vm9, %v319_v60, 0.0  ;;  %v393_v23 = vsel (!%p496_p9), %vm381_vm8, %v392_v22, 0.0 }
 0x27e   : > { %324 = vadd.xlane.f32.xlu1 %v323_v61  ;;  %394 = vadd.xlane.f32.xlu0 (!%p496_p9), %v393_v23 }
 0x30b   : > { %v325_v2 = vpop.xlane.xlu1 %324  ;;  %v395_v24 = vpop.xlane.xlu0 (!%p496_p9), %394 }
 0x30c   : > { %v326_v3 = vrot.slane %v325_v2, 4  ;;  %v396_v25 = vrot.slane (!%p496_p9), %v395_v24, 4 }
 0x30e   : > { %v327_v4 = vadd.f32 %v326_v3, %v325_v2  ;;  %v397_v26 = vadd.f32 (!%p496_p9), %v396_v25, %v395_v24 }
 0x310   : > { %v328_v6 = vrot.slane %v327_v4, 2  ;;  %v398_v27 = vrot.slane (!%p496_p9), %v397_v26, 2 }
 0x312   : > { %v329_v7 = vadd.f32 %v328_v6, %v327_v4  ;;  %v399_v28 = vadd.f32 (!%p496_p9), %v398_v27, %v397_v26 }
 0x314   : > { %v330_v9 = vrot.slane %v329_v7, 1  ;;  %v400_v29 = vrot.slane (!%p496_p9), %v399_v28, 1 }
 0x316   : > { %v331_v10 = vadd.f32 %v330_v9, %v329_v7  ;;  %v401_v30 = vadd.f32 (!%p496_p9), %v400_v29, %v399_v28 }
 0x318   : > { %518 = vpush %v331_v10 }
 0x319   : > { %520 = vpush %v346_v11 }
 0x31a   : > { %522 = vpush (!%p496_p9), %v401_v30 }
 0x348   : > { %387 = sbr.rel (%p496_p9) target bundleno = 863 (0x35f), region = 48 }
 0x349   : > { %s519_s20 = spop %518 }
 0x34a   : > { %v333_v14 = vstv %s519_s20  ;;  %s521_s26 = spop %520 }
 0x34b   : > { %v334_v15 = vadd.f32 %v333_v14, %v321_v12  ;;  %v348_v16 = vstv %s521_s26  ;;  %s523_s27 = spop (!%p496_p9), %522 }
 0x34c   : > { %v349_v17 = vadd.f32 %v348_v16, %v337_v13  ;;  %v403_v34 = vstv (!%p496_p9), %s523_s27 }
 0x34d   : > { %336 = vst.msk [vmem:[#allocation4] sm:$0x1] %vm335_vm10, %v334_v15 }
 0x34e   : > { %350 = vst.msk [vmem:[#allocation5] sm:$0x1] %vm335_vm10, %v349_v17 }
 0x354   : > { %v404_v31 = vld [vmem:[#allocation4] sm:$0x1] }
 0x355   : > { %v405_v32 = vld [vmem:[#allocation5] sm:$0x1] }
 0x356   : > { %v406_v33 = vsub.f32 %v404_v31, %v405_v32  ;;  %v409_v36 = vsub.f32 %v403_v34, %v405_v32 }
 0x358   : > { %v408_v35 = vmul.f32 0.05, %v406_v33  ;;  %v410_v37 = vmul.f32 0.05, %v409_v36 }
 0x35a   : > { %v411_v38 = vadd.f32 %v410_v37, %v408_v35 }
 0x35c   : > { %v412_v39 = vmul.f32 0.5, %v411_v38 }
 0x35e   : > { %413 = vst.msk [vmem:[#allocation12] sm:$0x1] %vm335_vm10, %v412_v39 }
 0x35f PF: > { %p545_p10 = scmp.eq.s32.totalorder %s778_s0, 2  ;;  %s735_s21 = smov [#allocation12]  }
 0x360   : > { %s421_s22 = sshll.u32 %s735_s21, 4  ;;  %s422_s22 = int_to_ptr.vmem [resolvable:$true] %s421_s22 }
 0x361   : > { %s656_s24 = scalar_lea.vmem %s422_s22, 16  ;;  %s662_s17 = scalar_lea.vmem %s422_s22, 32 }
 0x362   : > { %p657_p1 = scmp.ne.s32.totalorder %s422_s22, %s656_s24  ;;  %p663_p8 = scmp.lt.s32.totalorder %s422_s22, %s422_s22 }
 0x363   : > { %p664_p12 = scmp.lt.s32.totalorder %s662_s17, %s656_s24 }
 0x364   : > { %p658_p4 = pnand %p657_p1, %p545_p10 }
 0x365   : > { %p665_p0 = por %p664_p12, %p663_p8 }
 0x366   : > { %p659_p5 = pneg %p658_p4 }
 0x368   : > { %p666_p2 = pnand %p665_p0, %p659_p5 }
 0x36a   : > { %669 = shalt.err (!%p666_p2)
}
 0x36b   : > { %s670_s29 = scalar_lea.hbm %s947_s3, 16 }
 0x36c   : > { %p671_p13 = scmp.ne.s32.totalorder %s947_s3, %s670_s29  ;;  %p676_p6 = scmp.lt.u32.totalorder %s670_s29, %s947_s3 }
 0x36e   : > { %p672_p11 = pnand %p671_p13, %p545_p10 }
 0x370   : > { %p673_p3 = pneg %p672_p11 }
 0x372   : > { %p678_p7 = pnand %p676_p6, %p673_p3 }
 0x374   : > { %681 = shalt.err (!%p678_p7)
}
 0x375   : > { %531 = dma.vmem_to_hbm [thread:$0]  (%p545_p10), %s422_s22, 16, %s947_s3, [#allocation9]  }
 0x376   : > { %707 = dma.done.wait (%p545_p10), [#allocation9], 16  }
 0x377   : > { %709 = vsyncadd (%p545_p10), [#allocation9], 4294967280 }
 0x378 PF: > { %p16_p9 = scmp.ge.s32.totalorder %s804_s23, 5   ;;  %s960_s14 = smov %s716_s15 }
 0x379   : > { %s961_s15 = smov %s720_s16  ;;  %s962_s16 = smov %s830_s11 }
 0x37a   : > { %s963_s17 = smov %s804_s23  ;;  %18 = sbr.rel (!%p16_p9) target bundleno = 7 (0x7), region = 81 }
 0x381   :  { %434 = vsyncpa [#allocation8], 1 }
 0x382   :  { %436 = vsyncpa [#allocation8 + $0x1], 1 }
 0x383   :  { %437 = vsyncpa [#allocation11], 1 }
 0x384   :  { %438 = vsyncpa [#allocation9], 1 }
 0x385   :  { %440 = vsyncpa [#allocation9 + $0x1], 1 }

</bundles_post_ra>
